<compile_context>
chip_gen: v7x
topology: tpu7x:2x2x1
jax: 0.10.0
libtpu: 0.0.40
codegen_flags: <defaults>
</compile_context>

<pallas_src>
import math
import functools

import jax
import jax.numpy as jnp
from jax import lax
from jax.experimental import pallas as pl
from jax.experimental.pallas import tpu as pltpu


def _pick_head_group(num_heads, d_k, target_lanes=256):
    """Largest divisor G of num_heads with G * d_k <= target_lanes (always >= 1)."""
    best = 1
    for g in range(1, num_heads + 1):
        if num_heads % g == 0 and g * d_k <= max(target_lanes, d_k):
            best = g
    return best


def _pick_q_tile(seq_len, max_tile=256):
    """Query tile: full S if small, else the largest multiple-of-8 divisor <= max_tile."""
    if seq_len <= max_tile:
        return seq_len
    best = None
    for t in range(8, max_tile + 1, 8):
        if seq_len % t == 0:
            best = t
    return best if best is not None else seq_len


def _mha_kernel(xf_ref, xq_ref, wq_ref, bq_ref, wk_ref, wv_ref, bv_ref,
                wo_ref, bo_ref, out_ref, alpha_ref,
                k_scr, v_scr, ctx_scr, *, heads_per_group, d_k, exp_dtype):
    qi = pl.program_id(1)
    g = pl.program_id(2)

    # K / V for this head group: computed once per (batch, group) at the first
    # query tile, cached in VMEM scratch, reused for qi > 0.  Key bias dropped:
    # softmax is invariant to the per-row constant it would add.
    @pl.when(qi == 0)
    def _compute_kv():
        xf = xf_ref[0]                                                 # (S, D)
        k_scr[g] = jnp.dot(xf, wk_ref[0],
                           preferred_element_type=jnp.float32).astype(k_scr.dtype)
        v_scr[g] = (jnp.dot(xf, wv_ref[0], preferred_element_type=jnp.float32)
                    + bv_ref[0]).astype(v_scr.dtype)

    k = k_scr[g]                                                       # (S, GW)
    v = v_scr[g]                                                       # (S, GW)

    # Query tile projection (softmax scale pre-folded into Wq / bq on host).
    q = (jnp.dot(xq_ref[0], wq_ref[0], preferred_element_type=jnp.float32)
         + bq_ref[0]).astype(k.dtype)                                  # (TQ, GW)

    # Per-head softmax attention; context written into a lane-offset slab of a
    # VMEM scratch (no jnp.concatenate / cross-lane relayout).
    for i in range(heads_per_group):                                   # static unroll
        lo = i * d_k
        qi_h = q[:, lo:lo + d_k]
        ki_h = k[:, lo:lo + d_k]
        vi_h = v[:, lo:lo + d_k]

        # (TQ, S) scores: contract last dims directly (no explicit K^T).
        s = lax.dot_general(qi_h, ki_h, (((1,), (1,)), ((), ())),
                            preferred_element_type=jnp.float32)
        m = jnp.max(s, axis=-1, keepdims=True)
        e = jnp.exp((s - m).astype(exp_dtype)).astype(jnp.float32)
        alpha = e * pl.reciprocal(jnp.sum(e, axis=-1, keepdims=True), approx=True)

        alpha_ref[0, i] = alpha.astype(alpha_ref.dtype)
        ctx_scr[:, lo:lo + d_k] = jnp.dot(
            alpha.astype(vi_h.dtype), vi_h,
            preferred_element_type=jnp.float32).astype(ctx_scr.dtype)

    # Output projection accumulated into the resident (1, TQ, D) out block
    # across the head-group (reduction, "arbitrary") grid axis.
    @pl.when(g == 0)
    def _init():
        out_ref[0] = jnp.broadcast_to(bo_ref[...],
                                      out_ref.shape[1:]).astype(out_ref.dtype)

    out_ref[0] += jnp.dot(ctx_scr[...], wo_ref[0],
                          preferred_element_type=jnp.float32).astype(out_ref.dtype)


def multi_head_attention(x, params, num_heads, *,
                         compute_dtype=jnp.bfloat16,
                         alpha_dtype=jnp.bfloat16,
                         exp_dtype=jnp.float32,    # set bf16 on v6e/v7x (bf16 EUP)
                         target_lanes=256,         # set 128 on v5e
                         q_tile=None):
    """Pallas forward pass. Returns (output, alpha) matching the PyTorch module's
    default path (self-attention, padding_mask=None, causal_mask=False)."""
    B, S, D = x.shape
    assert D % num_heads == 0
    H = num_heads
    d_k = D // H
    scale = 1.0 / math.sqrt(d_k)

    G = _pick_head_group(H, d_k, target_lanes)    # heads per grid step
    NG = H // G                                   # number of head groups
    GW = G * d_k                                  # group width in lanes
    TQ = _pick_q_tile(S) if q_tile is None else q_tile
    assert S % TQ == 0
    NQ = S // TQ

    cdt = jnp.dtype(x.dtype) if compute_dtype is None else jnp.dtype(compute_dtype)
    f32 = jnp.float32

    # Host-side glue: fold softmax scale into Wq/bq, reshape (in,out) weights
    # into per-group slabs.  Matmul operands in compute dtype, biases in f32.
    wq = (params["wq"].astype(f32) * scale).reshape(D, NG, GW).transpose(1, 0, 2).astype(cdt)
    bq = (params["bq"].astype(f32) * scale).reshape(NG, 1, GW)
    wk = params["wk"].reshape(D, NG, GW).transpose(1, 0, 2).astype(cdt)
    wv = params["wv"].reshape(D, NG, GW).transpose(1, 0, 2).astype(cdt)
    bv = params["bv"].astype(f32).reshape(NG, 1, GW)
    wo = params["wo"].reshape(NG, GW, D).astype(cdt)
    bo = params["bo"].astype(f32).reshape(1, D)
    xc = x.astype(cdt)

    kernel = functools.partial(_mha_kernel, heads_per_group=G, d_k=d_k,
                               exp_dtype=jnp.dtype(exp_dtype))

    # VMEM budget: double-buffered per-step tiles + persistent scratch + f32
    # temporaries, capped at ~80% of this generation's physical VMEM.
    in_b = cdt.itemsize
    a_b = jnp.dtype(alpha_dtype).itemsize
    block_bytes = (S * D * in_b + TQ * D * in_b            # X (K/V source) + X query tile
                   + (3 * D * GW + GW * D) * in_b          # Wq/Wk/Wv/Wo group slabs
                   + (2 * GW + D) * 4                      # bq, bv, bo (f32)
                   + TQ * D * 4                            # out block (f32)
                   + G * TQ * S * a_b)                      # alpha block
    scratch_bytes = (2 * NG * S * GW + TQ * GW) * in_b
    tmp_bytes = (2 * S * GW + 2 * TQ * GW + 4 * TQ * S) * 4
    try:
        phys_vmem = pltpu.get_tpu_info().vmem_capacity_bytes
    except Exception:
        phys_vmem = 64 * 2**20                              # v7x-safe fallback
    vmem_cap = int(phys_vmem * 0.8)
    vmem_limit = int(min(vmem_cap,
                         max(16 * 2**20, 2 * block_bytes + scratch_bytes + tmp_bytes)))

    w_spec = pl.BlockSpec((1, D, GW), lambda b, q, g: (g, 0, 0))
    b_spec = pl.BlockSpec((1, 1, GW), lambda b, q, g: (g, 0, 0))

    out, alpha = pl.pallas_call(
        kernel,
        out_shape=(
            jax.ShapeDtypeStruct((B, S, D), jnp.float32),
            jax.ShapeDtypeStruct((B, H, S, S), alpha_dtype),
        ),
        grid_spec=pltpu.PrefetchScalarGridSpec(
            num_scalar_prefetch=0,
            grid=(B, NQ, NG),
            in_specs=[
                pl.BlockSpec((1, S, D), lambda b, q, g: (b, 0, 0)),    # X (K/V source)
                pl.BlockSpec((1, TQ, D), lambda b, q, g: (b, q, 0)),   # X query tile
                w_spec, b_spec,                                        # Wq, bq (pre-scaled)
                w_spec,                                                # Wk (key bias dropped)
                w_spec, b_spec,                                        # Wv, bv
                pl.BlockSpec((1, GW, D), lambda b, q, g: (g, 0, 0)),   # Wo
                pl.BlockSpec((1, D), lambda b, q, g: (0, 0)),          # bo
            ],
            out_specs=(
                # Output block resident across the head-group (reduction) axis.
                pl.BlockSpec((1, TQ, D), lambda b, q, g: (b, q, 0)),
                pl.BlockSpec((1, G, TQ, S), lambda b, q, g: (b, g, q, 0)),
            ),
            scratch_shapes=[
                pltpu.VMEM((NG, S, GW), cdt),   # K cache (per head group)
                pltpu.VMEM((NG, S, GW), cdt),   # V cache (per head group)
                pltpu.VMEM((TQ, GW), cdt),      # grouped context slab
            ],
        ),
        compiler_params=pltpu.CompilerParams(
            # K/V scratch caching requires sequential query tiles within a
            # batch, so only the batch axis is megacore-parallel.
            dimension_semantics=("parallel", "arbitrary", "arbitrary"),
            vmem_limit_bytes=vmem_limit),
    )(xc, xc, wq, bq, wk, wv, bv, wo, bo)
    return out, alpha


def _reference(x, params, num_heads):
    """Plain-JAX reference matching the PyTorch forward (no masks)."""
    B, S, D = x.shape
    d_k = D // num_heads
    q = x @ params["wq"] + params["bq"]
    k = x @ params["wk"] + params["bk"]
    v = x @ params["wv"] + params["bv"]
    q = q.reshape(B, S, num_heads, d_k).transpose(0, 2, 1, 3)
    k = k.reshape(B, S, num_heads, d_k).transpose(0, 2, 1, 3)
    v = v.reshape(B, S, num_heads, d_k).transpose(0, 2, 1, 3)
    scores = jnp.einsum("bhqd,bhkd->bhqk", q, k) / jnp.sqrt(jnp.float32(d_k))
    alpha = jax.nn.softmax(scores, axis=-1)
    ctx = jnp.einsum("bhqk,bhkd->bhqd", alpha, v)
    ctx = ctx.transpose(0, 2, 1, 3).reshape(B, S, D)
    out = ctx @ params["wo"] + params["bo"]
    return out, alpha


if __name__ == "__main__":
    B, S, D, H = 2, 8, 32, 4   # batch, seq, d_model, num_heads
    # TODO(synk): padding_mask / causal_mask / cross-attention args of the
    # PyTorch forward are not implemented (default self-attention path only).

    key = jax.random.PRNGKey(0)
    kx, kp = jax.random.split(key)
    x = jax.random.normal(kx, (B, S, D), dtype=jnp.float32)

    pkeys = jax.random.split(kp, 8)
    s = 1.0 / math.sqrt(D)
    params = {
        "wq": jax.random.normal(pkeys[0], (D, D), jnp.float32) * s,
        "bq": jax.random.normal(pkeys[1], (D,), jnp.float32) * s,
        "wk": jax.random.normal(pkeys[2], (D, D), jnp.float32) * s,
        "bk": jax.random.normal(pkeys[3], (D,), jnp.float32) * s,   # unused by kernel (softmax-invariant)
        "wv": jax.random.normal(pkeys[4], (D, D), jnp.float32) * s,
        "bv": jax.random.normal(pkeys[5], (D,), jnp.float32) * s,
        "wo": jax.random.normal(pkeys[6], (D, D), jnp.float32) * s,
        "bo": jax.random.normal(pkeys[7], (D,), jnp.float32) * s,
    }

    ref_out, ref_alpha = _reference(x, params, H)

    # Default (bf16 compute, bf16 alpha) path.
    out, alpha = multi_head_attention(x, params, H)
    out, alpha = jax.block_until_ready((out, alpha))
    assert out.shape == (B, S, D) and alpha.shape == (B, H, S, S)
    assert jnp.allclose(out, ref_out, atol=6e-2, rtol=6e-2)
    assert jnp.allclose(alpha.astype(jnp.float32), ref_alpha, atol=3e-2, rtol=3e-2)

    # f32 path: tighter check of the kernel math (approx reciprocal aside).
    out32, alpha32 = multi_head_attention(
        x, params, H, compute_dtype=jnp.float32, alpha_dtype=jnp.float32)
    out32, alpha32 = jax.block_until_ready((out32, alpha32))
    assert jnp.allclose(out32, ref_out, atol=2e-2, rtol=2e-2)
    assert jnp.allclose(alpha32, ref_alpha, atol=1e-2, rtol=1e-2)

    print("KERNEL_OK")
</pallas_src>

<mosaic_0001>
module attributes {stable_mosaic.version = 11 : i64} {
  func.func @_mha_kernel(%arg0: i32, %arg1: i32, %arg2: i32, %arg3: memref<1x8x32xbf16, #tpu.memory_space<vmem>>, %arg4: memref<1x8x32xbf16, #tpu.memory_space<vmem>>, %arg5: memref<1x32x32xbf16, #tpu.memory_space<vmem>>, %arg6: memref<1x1x32xf32, #tpu.memory_space<vmem>>, %arg7: memref<1x32x32xbf16, #tpu.memory_space<vmem>>, %arg8: memref<1x32x32xbf16, #tpu.memory_space<vmem>>, %arg9: memref<1x1x32xf32, #tpu.memory_space<vmem>>, %arg10: memref<1x32x32xbf16, #tpu.memory_space<vmem>>, %arg11: memref<1x32xf32, #tpu.memory_space<vmem>>, %arg12: memref<1x8x32xf32, #tpu.memory_space<vmem>>, %arg13: memref<1x4x8x8xbf16, #tpu.memory_space<vmem>>, %arg14: memref<1x8x32xbf16, #tpu.memory_space<vmem>>, %arg15: memref<1x8x32xbf16, #tpu.memory_space<vmem>>, %arg16: memref<8x32xbf16, #tpu.memory_space<vmem>>) attributes {dimension_semantics = [#tpu.dimension_semantics<parallel>, #tpu.dimension_semantics<arbitrary>, #tpu.dimension_semantics<arbitrary>], iteration_bounds = array<i64: 2, 1, 1>, scalar_prefetch = 0 : i64, scratch_operands = 3 : i64, tpu.core_type = #tpu.core_type<tc>, window_params = [{transform_indices = @transform_0, window_bounds = array<i64: 1, 8, 32>}, {transform_indices = @transform_1, window_bounds = array<i64: 1, 8, 32>}, {transform_indices = @transform_2, window_bounds = array<i64: 1, 32, 32>}, {transform_indices = @transform_3, window_bounds = array<i64: 1, 1, 32>}, {transform_indices = @transform_4, window_bounds = array<i64: 1, 32, 32>}, {transform_indices = @transform_5, window_bounds = array<i64: 1, 32, 32>}, {transform_indices = @transform_6, window_bounds = array<i64: 1, 1, 32>}, {transform_indices = @transform_7, window_bounds = array<i64: 1, 32, 32>}, {pipeline_mode = #tpu.pipeline_mode<synchronous>, transform_indices = @transform_8, window_bounds = array<i64: 1, 32>}, {transform_indices = @transform_9, window_bounds = array<i64: 1, 8, 32>}, {transform_indices = @transform_10, window_bounds = array<i64: 1, 4, 8, 8>}]} {
    %c0_i32 = arith.constant 0 : i32
    %0 = arith.cmpi eq, %arg1, %c0_i32 : i32
    %1 = arith.extui %0 : i1 to i32
    %c0_i32_0 = arith.constant 0 : i32
    %2 = arith.cmpi ne, %1, %c0_i32_0 : i32
    scf.if %2 {
      %c0_61 = arith.constant 0 : index
      %c0_62 = arith.constant 0 : index
      %c0_63 = arith.constant 0 : index
      %120 = vector.load %arg3[%c0_61, %c0_62, %c0_63] : memref<1x8x32xbf16, #tpu.memory_space<vmem>>, vector<1x8x32xbf16>
      %121 = vector.shape_cast %120 : vector<1x8x32xbf16> to vector<8x32xbf16>
      %c0_64 = arith.constant 0 : index
      %c0_65 = arith.constant 0 : index
      %c0_66 = arith.constant 0 : index
      %122 = vector.load %arg7[%c0_64, %c0_65, %c0_66] : memref<1x32x32xbf16, #tpu.memory_space<vmem>>, vector<1x32x32xbf16>
      %123 = vector.shape_cast %122 : vector<1x32x32xbf16> to vector<32x32xbf16>
      %cst_67 = arith.constant dense<0.000000e+00> : vector<8x32xf32>
      %124 = tpu.matmul %121, %123, %cst_67 {dimension_numbers = #tpu.dot_dimension_numbers<[1], [0], [0], [1], [0, 0, 1, 1], [], []>} : vector<8x32xbf16>, vector<32x32xbf16>, vector<8x32xf32> -> vector<8x32xf32>
      %125 = arith.truncf %124 : vector<8x32xf32> to vector<8x32xbf16>
      %126 = arith.index_cast %arg2 : i32 to index
      %c0_68 = arith.constant 0 : index
      %c0_69 = arith.constant 0 : index
      %127 = vector.load %arg14[%126, %c0_68, %c0_69] : memref<1x8x32xbf16, #tpu.memory_space<vmem>>, vector<1x8x32xbf16>
      %128 = vector.shape_cast %127 : vector<1x8x32xbf16> to vector<8x32xbf16>
      %129 = vector.shape_cast %125 : vector<8x32xbf16> to vector<1x8x32xbf16>
      tpu.vector_store %arg14[%126, %c0_68, %c0_69], %129 {strides = array<i32>} : memref<1x8x32xbf16, #tpu.memory_space<vmem>>, vector<1x8x32xbf16>,
      %c0_70 = arith.constant 0 : index
      %c0_71 = arith.constant 0 : index
      %c0_72 = arith.constant 0 : index
      %130 = vector.load %arg8[%c0_70, %c0_71, %c0_72] : memref<1x32x32xbf16, #tpu.memory_space<vmem>>, vector<1x32x32xbf16>
      %131 = vector.shape_cast %130 : vector<1x32x32xbf16> to vector<32x32xbf16>
      %cst_73 = arith.constant dense<0.000000e+00> : vector<8x32xf32>
      %132 = tpu.matmul %121, %131, %cst_73 {dimension_numbers = #tpu.dot_dimension_numbers<[1], [0], [0], [1], [0, 0, 1, 1], [], []>} : vector<8x32xbf16>, vector<32x32xbf16>, vector<8x32xf32> -> vector<8x32xf32>
      %c0_74 = arith.constant 0 : index
      %c0_75 = arith.constant 0 : index
      %c0_76 = arith.constant 0 : index
      %133 = vector.load %arg9[%c0_74, %c0_75, %c0_76] : memref<1x1x32xf32, #tpu.memory_space<vmem>>, vector<1x1x32xf32>
      %134 = vector.shape_cast %133 : vector<1x1x32xf32> to vector<1x32xf32>
      %135 = vector.broadcast %134 : vector<1x32xf32> to vector<8x32xf32>
      %136 = arith.addf %132, %135 : vector<8x32xf32>
      %137 = arith.truncf %136 : vector<8x32xf32> to vector<8x32xbf16>
      %138 = arith.index_cast %arg2 : i32 to index
      %c0_77 = arith.constant 0 : index
      %c0_78 = arith.constant 0 : index
      %139 = vector.load %arg15[%138, %c0_77, %c0_78] : memref<1x8x32xbf16, #tpu.memory_space<vmem>>, vector<1x8x32xbf16>
      %140 = vector.shape_cast %139 : vector<1x8x32xbf16> to vector<8x32xbf16>
      %141 = vector.shape_cast %137 : vector<8x32xbf16> to vector<1x8x32xbf16>
      tpu.vector_store %arg15[%138, %c0_77, %c0_78], %141 {strides = array<i32>} : memref<1x8x32xbf16, #tpu.memory_space<vmem>>, vector<1x8x32xbf16>,
    } else {
    }
    %3 = arith.index_cast %arg2 : i32 to index
    %c0 = arith.constant 0 : index
    %c0_1 = arith.constant 0 : index
    %4 = vector.load %arg14[%3, %c0, %c0_1] : memref<1x8x32xbf16, #tpu.memory_space<vmem>>, vector<1x8x32xbf16>
    %5 = vector.shape_cast %4 : vector<1x8x32xbf16> to vector<8x32xbf16>
    %6 = arith.index_cast %arg2 : i32 to index
    %c0_2 = arith.constant 0 : index
    %c0_3 = arith.constant 0 : index
    %7 = vector.load %arg15[%6, %c0_2, %c0_3] : memref<1x8x32xbf16, #tpu.memory_space<vmem>>, vector<1x8x32xbf16>
    %8 = vector.shape_cast %7 : vector<1x8x32xbf16> to vector<8x32xbf16>
    %c0_4 = arith.constant 0 : index
    %c0_5 = arith.constant 0 : index
    %c0_6 = arith.constant 0 : index
    %9 = vector.load %arg4[%c0_4, %c0_5, %c0_6] : memref<1x8x32xbf16, #tpu.memory_space<vmem>>, vector<1x8x32xbf16>
    %10 = vector.shape_cast %9 : vector<1x8x32xbf16> to vector<8x32xbf16>
    %c0_7 = arith.constant 0 : index
    %c0_8 = arith.constant 0 : index
    %c0_9 = arith.constant 0 : index
    %11 = vector.load %arg5[%c0_7, %c0_8, %c0_9] : memref<1x32x32xbf16, #tpu.memory_space<vmem>>, vector<1x32x32xbf16>
    %12 = vector.shape_cast %11 : vector<1x32x32xbf16> to vector<32x32xbf16>
    %cst = arith.constant dense<0.000000e+00> : vector<8x32xf32>
    %13 = tpu.matmul %10, %12, %cst {dimension_numbers = #tpu.dot_dimension_numbers<[1], [0], [0], [1], [0, 0, 1, 1], [], []>} : vector<8x32xbf16>, vector<32x32xbf16>, vector<8x32xf32> -> vector<8x32xf32>
    %c0_10 = arith.constant 0 : index
    %c0_11 = arith.constant 0 : index
    %c0_12 = arith.constant 0 : index
    %14 = vector.load %arg6[%c0_10, %c0_11, %c0_12] : memref<1x1x32xf32, #tpu.memory_space<vmem>>, vector<1x1x32xf32>
    %15 = vector.shape_cast %14 : vector<1x1x32xf32> to vector<1x32xf32>
    %16 = vector.broadcast %15 : vector<1x32xf32> to vector<8x32xf32>
    %17 = arith.addf %13, %16 : vector<8x32xf32>
    %18 = arith.truncf %17 : vector<8x32xf32> to vector<8x32xbf16>
    %19 = vector.extract_strided_slice %18 {offsets = [0, 0], sizes = [8, 8], strides = [1, 1]} : vector<8x32xbf16> to vector<8x8xbf16>
    %20 = vector.extract_strided_slice %5 {offsets = [0, 0], sizes = [8, 8], strides = [1, 1]} : vector<8x32xbf16> to vector<8x8xbf16>
    %21 = vector.extract_strided_slice %8 {offsets = [0, 0], sizes = [8, 8], strides = [1, 1]} : vector<8x32xbf16> to vector<8x8xbf16>
    %cst_13 = arith.constant dense<0.000000e+00> : vector<8x8xf32>
    %22 = tpu.matmul %19, %20, %cst_13 {dimension_numbers = #tpu.dot_dimension_numbers<[1], [1], [0], [0], [0, 0, 1, 0], [], []>} : vector<8x8xbf16>, vector<8x8xbf16>, vector<8x8xf32> -> vector<8x8xf32>
    %cst_14 = arith.constant dense<0xFF800000> : vector<8xf32>
    %23 = vector.multi_reduction <maximumf>, %22, %cst_14 [1] : vector<8x8xf32> to vector<8xf32>
    %24 = vector.shape_cast %23 : vector<8xf32> to vector<8x1xf32>
    %25 = vector.broadcast %24 : vector<8x1xf32> to vector<8x8xf32>
    %26 = arith.subf %22, %25 : vector<8x8xf32>
    %27 = math.exp %26 : vector<8x8xf32>
    %cst_15 = arith.constant dense<0.000000e+00> : vector<8xf32>
    %28 = vector.multi_reduction <add>, %27, %cst_15 [1] : vector<8x8xf32> to vector<8xf32>
    %29 = vector.shape_cast %28 : vector<8xf32> to vector<8x1xf32>
    %30 = tpu.reciprocal %29 {approx = true} : vector<8x1xf32> -> vector<8x1xf32>
    %31 = vector.broadcast %30 : vector<8x1xf32> to vector<8x8xf32>
    %32 = arith.mulf %27, %31 : vector<8x8xf32>
    %33 = arith.truncf %32 : vector<8x8xf32> to vector<8x8xbf16>
    %c0_16 = arith.constant 0 : index
    %c0_17 = arith.constant 0 : index
    %c0_18 = arith.constant 0 : index
    %c0_19 = arith.constant 0 : index
    %34 = vector.load %arg13[%c0_16, %c0_17, %c0_18, %c0_19] : memref<1x4x8x8xbf16, #tpu.memory_space<vmem>>, vector<1x1x8x8xbf16>
    %35 = vector.shape_cast %34 : vector<1x1x8x8xbf16> to vector<8x8xbf16>
    %36 = vector.shape_cast %33 : vector<8x8xbf16> to vector<1x1x8x8xbf16>
    tpu.vector_store %arg13[%c0_16, %c0_17, %c0_18, %c0_19], %36 {strides = array<i32>} : memref<1x4x8x8xbf16, #tpu.memory_space<vmem>>, vector<1x1x8x8xbf16>,
    %37 = arith.truncf %32 : vector<8x8xf32> to vector<8x8xbf16>
    %cst_20 = arith.constant dense<0.000000e+00> : vector<8x8xf32>
    %38 = tpu.matmul %37, %21, %cst_20 {dimension_numbers = #tpu.dot_dimension_numbers<[1], [0], [0], [1], [0, 0, 1, 1], [], []>} : vector<8x8xbf16>, vector<8x8xbf16>, vector<8x8xf32> -> vector<8x8xf32>
    %39 = arith.truncf %38 : vector<8x8xf32> to vector<8x8xbf16>
    %c0_21 = arith.constant 0 : index
    %c0_22 = arith.constant 0 : index
    %40 = vector.load %arg16[%c0_21, %c0_22] : memref<8x32xbf16, #tpu.memory_space<vmem>>, vector<8x8xbf16>
    tpu.vector_store %arg16[%c0_21, %c0_22], %39 {strides = array<i32>} : memref<8x32xbf16, #tpu.memory_space<vmem>>, vector<8x8xbf16>,
    %41 = vector.extract_strided_slice %18 {offsets = [0, 8], sizes = [8, 8], strides = [1, 1]} : vector<8x32xbf16> to vector<8x8xbf16>
    %42 = vector.extract_strided_slice %5 {offsets = [0, 8], sizes = [8, 8], strides = [1, 1]} : vector<8x32xbf16> to vector<8x8xbf16>
    %43 = vector.extract_strided_slice %8 {offsets = [0, 8], sizes = [8, 8], strides = [1, 1]} : vector<8x32xbf16> to vector<8x8xbf16>
    %cst_23 = arith.constant dense<0.000000e+00> : vector<8x8xf32>
    %44 = tpu.matmul %41, %42, %cst_23 {dimension_numbers = #tpu.dot_dimension_numbers<[1], [1], [0], [0], [0, 0, 1, 0], [], []>} : vector<8x8xbf16>, vector<8x8xbf16>, vector<8x8xf32> -> vector<8x8xf32>
    %cst_24 = arith.constant dense<0xFF800000> : vector<8xf32>
    %45 = vector.multi_reduction <maximumf>, %44, %cst_24 [1] : vector<8x8xf32> to vector<8xf32>
    %46 = vector.shape_cast %45 : vector<8xf32> to vector<8x1xf32>
    %47 = vector.broadcast %46 : vector<8x1xf32> to vector<8x8xf32>
    %48 = arith.subf %44, %47 : vector<8x8xf32>
    %49 = math.exp %48 : vector<8x8xf32>
    %cst_25 = arith.constant dense<0.000000e+00> : vector<8xf32>
    %50 = vector.multi_reduction <add>, %49, %cst_25 [1] : vector<8x8xf32> to vector<8xf32>
    %51 = vector.shape_cast %50 : vector<8xf32> to vector<8x1xf32>
    %52 = tpu.reciprocal %51 {approx = true} : vector<8x1xf32> -> vector<8x1xf32>
    %53 = vector.broadcast %52 : vector<8x1xf32> to vector<8x8xf32>
    %54 = arith.mulf %49, %53 : vector<8x8xf32>
    %55 = arith.truncf %54 : vector<8x8xf32> to vector<8x8xbf16>
    %c0_26 = arith.constant 0 : index
    %c1 = arith.constant 1 : index
    %c0_27 = arith.constant 0 : index
    %c0_28 = arith.constant 0 : index
    %56 = vector.load %arg13[%c0_26, %c1, %c0_27, %c0_28] : memref<1x4x8x8xbf16, #tpu.memory_space<vmem>>, vector<1x1x8x8xbf16>
    %57 = vector.shape_cast %56 : vector<1x1x8x8xbf16> to vector<8x8xbf16>
    %58 = vector.shape_cast %55 : vector<8x8xbf16> to vector<1x1x8x8xbf16>
    tpu.vector_store %arg13[%c0_26, %c1, %c0_27, %c0_28], %58 {strides = array<i32>} : memref<1x4x8x8xbf16, #tpu.memory_space<vmem>>, vector<1x1x8x8xbf16>,
    %59 = arith.truncf %54 : vector<8x8xf32> to vector<8x8xbf16>
    %cst_29 = arith.constant dense<0.000000e+00> : vector<8x8xf32>
    %60 = tpu.matmul %59, %43, %cst_29 {dimension_numbers = #tpu.dot_dimension_numbers<[1], [0], [0], [1], [0, 0, 1, 1], [], []>} : vector<8x8xbf16>, vector<8x8xbf16>, vector<8x8xf32> -> vector<8x8xf32>
    %61 = arith.truncf %60 : vector<8x8xf32> to vector<8x8xbf16>
    %c0_30 = arith.constant 0 : index
    %c8 = arith.constant 8 : index
    %62 = vector.load %arg16[%c0_30, %c8] : memref<8x32xbf16, #tpu.memory_space<vmem>>, vector<8x8xbf16>
    tpu.vector_store %arg16[%c0_30, %c8], %61 {strides = array<i32>} : memref<8x32xbf16, #tpu.memory_space<vmem>>, vector<8x8xbf16>,
    %63 = vector.extract_strided_slice %18 {offsets = [0, 16], sizes = [8, 8], strides = [1, 1]} : vector<8x32xbf16> to vector<8x8xbf16>
    %64 = vector.extract_strided_slice %5 {offsets = [0, 16], sizes = [8, 8], strides = [1, 1]} : vector<8x32xbf16> to vector<8x8xbf16>
    %65 = vector.extract_strided_slice %8 {offsets = [0, 16], sizes = [8, 8], strides = [1, 1]} : vector<8x32xbf16> to vector<8x8xbf16>
    %cst_31 = arith.constant dense<0.000000e+00> : vector<8x8xf32>
    %66 = tpu.matmul %63, %64, %cst_31 {dimension_numbers = #tpu.dot_dimension_numbers<[1], [1], [0], [0], [0, 0, 1, 0], [], []>} : vector<8x8xbf16>, vector<8x8xbf16>, vector<8x8xf32> -> vector<8x8xf32>
    %cst_32 = arith.constant dense<0xFF800000> : vector<8xf32>
    %67 = vector.multi_reduction <maximumf>, %66, %cst_32 [1] : vector<8x8xf32> to vector<8xf32>
    %68 = vector.shape_cast %67 : vector<8xf32> to vector<8x1xf32>
    %69 = vector.broadcast %68 : vector<8x1xf32> to vector<8x8xf32>
    %70 = arith.subf %66, %69 : vector<8x8xf32>
    %71 = math.exp %70 : vector<8x8xf32>
    %cst_33 = arith.constant dense<0.000000e+00> : vector<8xf32>
    %72 = vector.multi_reduction <add>, %71, %cst_33 [1] : vector<8x8xf32> to vector<8xf32>
    %73 = vector.shape_cast %72 : vector<8xf32> to vector<8x1xf32>
    %74 = tpu.reciprocal %73 {approx = true} : vector<8x1xf32> -> vector<8x1xf32>
    %75 = vector.broadcast %74 : vector<8x1xf32> to vector<8x8xf32>
    %76 = arith.mulf %71, %75 : vector<8x8xf32>
    %77 = arith.truncf %76 : vector<8x8xf32> to vector<8x8xbf16>
    %c0_34 = arith.constant 0 : index
    %c2 = arith.constant 2 : index
    %c0_35 = arith.constant 0 : index
    %c0_36 = arith.constant 0 : index
    %78 = vector.load %arg13[%c0_34, %c2, %c0_35, %c0_36] : memref<1x4x8x8xbf16, #tpu.memory_space<vmem>>, vector<1x1x8x8xbf16>
    %79 = vector.shape_cast %78 : vector<1x1x8x8xbf16> to vector<8x8xbf16>
    %80 = vector.shape_cast %77 : vector<8x8xbf16> to vector<1x1x8x8xbf16>
    tpu.vector_store %arg13[%c0_34, %c2, %c0_35, %c0_36], %80 {strides = array<i32>} : memref<1x4x8x8xbf16, #tpu.memory_space<vmem>>, vector<1x1x8x8xbf16>,
    %81 = arith.truncf %76 : vector<8x8xf32> to vector<8x8xbf16>
    %cst_37 = arith.constant dense<0.000000e+00> : vector<8x8xf32>
    %82 = tpu.matmul %81, %65, %cst_37 {dimension_numbers = #tpu.dot_dimension_numbers<[1], [0], [0], [1], [0, 0, 1, 1], [], []>} : vector<8x8xbf16>, vector<8x8xbf16>, vector<8x8xf32> -> vector<8x8xf32>
    %83 = arith.truncf %82 : vector<8x8xf32> to vector<8x8xbf16>
    %c0_38 = arith.constant 0 : index
    %c16 = arith.constant 16 : index
    %84 = vector.load %arg16[%c0_38, %c16] : memref<8x32xbf16, #tpu.memory_space<vmem>>, vector<8x8xbf16>
    tpu.vector_store %arg16[%c0_38, %c16], %83 {strides = array<i32>} : memref<8x32xbf16, #tpu.memory_space<vmem>>, vector<8x8xbf16>,
    %85 = vector.extract_strided_slice %18 {offsets = [0, 24], sizes = [8, 8], strides = [1, 1]} : vector<8x32xbf16> to vector<8x8xbf16>
    %86 = vector.extract_strided_slice %5 {offsets = [0, 24], sizes = [8, 8], strides = [1, 1]} : vector<8x32xbf16> to vector<8x8xbf16>
    %87 = vector.extract_strided_slice %8 {offsets = [0, 24], sizes = [8, 8], strides = [1, 1]} : vector<8x32xbf16> to vector<8x8xbf16>
    %cst_39 = arith.constant dense<0.000000e+00> : vector<8x8xf32>
    %88 = tpu.matmul %85, %86, %cst_39 {dimension_numbers = #tpu.dot_dimension_numbers<[1], [1], [0], [0], [0, 0, 1, 0], [], []>} : vector<8x8xbf16>, vector<8x8xbf16>, vector<8x8xf32> -> vector<8x8xf32>
    %cst_40 = arith.constant dense<0xFF800000> : vector<8xf32>
    %89 = vector.multi_reduction <maximumf>, %88, %cst_40 [1] : vector<8x8xf32> to vector<8xf32>
    %90 = vector.shape_cast %89 : vector<8xf32> to vector<8x1xf32>
    %91 = vector.broadcast %90 : vector<8x1xf32> to vector<8x8xf32>
    %92 = arith.subf %88, %91 : vector<8x8xf32>
    %93 = math.exp %92 : vector<8x8xf32>
    %cst_41 = arith.constant dense<0.000000e+00> : vector<8xf32>
    %94 = vector.multi_reduction <add>, %93, %cst_41 [1] : vector<8x8xf32> to vector<8xf32>
    %95 = vector.shape_cast %94 : vector<8xf32> to vector<8x1xf32>
    %96 = tpu.reciprocal %95 {approx = true} : vector<8x1xf32> -> vector<8x1xf32>
    %97 = vector.broadcast %96 : vector<8x1xf32> to vector<8x8xf32>
    %98 = arith.mulf %93, %97 : vector<8x8xf32>
    %99 = arith.truncf %98 : vector<8x8xf32> to vector<8x8xbf16>
    %c0_42 = arith.constant 0 : index
    %c3 = arith.constant 3 : index
    %c0_43 = arith.constant 0 : index
    %c0_44 = arith.constant 0 : index
    %100 = vector.load %arg13[%c0_42, %c3, %c0_43, %c0_44] : memref<1x4x8x8xbf16, #tpu.memory_space<vmem>>, vector<1x1x8x8xbf16>
    %101 = vector.shape_cast %100 : vector<1x1x8x8xbf16> to vector<8x8xbf16>
    %102 = vector.shape_cast %99 : vector<8x8xbf16> to vector<1x1x8x8xbf16>
    tpu.vector_store %arg13[%c0_42, %c3, %c0_43, %c0_44], %102 {strides = array<i32>} : memref<1x4x8x8xbf16, #tpu.memory_space<vmem>>, vector<1x1x8x8xbf16>,
    %103 = arith.truncf %98 : vector<8x8xf32> to vector<8x8xbf16>
    %cst_45 = arith.constant dense<0.000000e+00> : vector<8x8xf32>
    %104 = tpu.matmul %103, %87, %cst_45 {dimension_numbers = #tpu.dot_dimension_numbers<[1], [0], [0], [1], [0, 0, 1, 1], [], []>} : vector<8x8xbf16>, vector<8x8xbf16>, vector<8x8xf32> -> vector<8x8xf32>
    %105 = arith.truncf %104 : vector<8x8xf32> to vector<8x8xbf16>
    %c0_46 = arith.constant 0 : index
    %c24 = arith.constant 24 : index
    %106 = vector.load %arg16[%c0_46, %c24] : memref<8x32xbf16, #tpu.memory_space<vmem>>, vector<8x8xbf16>
    tpu.vector_store %arg16[%c0_46, %c24], %105 {strides = array<i32>} : memref<8x32xbf16, #tpu.memory_space<vmem>>, vector<8x8xbf16>,
    %c0_i32_47 = arith.constant 0 : i32
    %107 = arith.cmpi eq, %arg2, %c0_i32_47 : i32
    %108 = arith.extui %107 : i1 to i32
    %c0_i32_48 = arith.constant 0 : i32
    %109 = arith.cmpi ne, %108, %c0_i32_48 : i32
    scf.if %109 {
      %c0_61 = arith.constant 0 : index
      %c0_62 = arith.constant 0 : index
      %120 = vector.load %arg11[%c0_61, %c0_62] : memref<1x32xf32, #tpu.memory_space<vmem>>, vector<1x32xf32>
      %121 = vector.shape_cast %120 : vector<1x32xf32> to vector<1x32xf32>
      %122 = vector.broadcast %121 : vector<1x32xf32> to vector<8x32xf32>
      %c0_63 = arith.constant 0 : index
      %c0_64 = arith.constant 0 : index
      %c0_65 = arith.constant 0 : index
      %123 = vector.load %arg12[%c0_63, %c0_64, %c0_65] : memref<1x8x32xf32, #tpu.memory_space<vmem>>, vector<1x8x32xf32>
      %124 = vector.shape_cast %123 : vector<1x8x32xf32> to vector<8x32xf32>
      %125 = vector.shape_cast %122 : vector<8x32xf32> to vector<1x8x32xf32>
      tpu.vector_store %arg12[%c0_63, %c0_64, %c0_65], %125 {strides = array<i32>} : memref<1x8x32xf32, #tpu.memory_space<vmem>>, vector<1x8x32xf32>,
    } else {
    }
    %c0_49 = arith.constant 0 : index
    %c0_50 = arith.constant 0 : index
    %c0_51 = arith.constant 0 : index
    %110 = vector.load %arg12[%c0_49, %c0_50, %c0_51] : memref<1x8x32xf32, #tpu.memory_space<vmem>>, vector<1x8x32xf32>
    %111 = vector.shape_cast %110 : vector<1x8x32xf32> to vector<8x32xf32>
    %c0_52 = arith.constant 0 : index
    %c0_53 = arith.constant 0 : index
    %112 = vector.load %arg16[%c0_52, %c0_53] : memref<8x32xbf16, #tpu.memory_space<vmem>>, vector<8x32xbf16>
    %c0_54 = arith.constant 0 : index
    %c0_55 = arith.constant 0 : index
    %c0_56 = arith.constant 0 : index
    %113 = vector.load %arg10[%c0_54, %c0_55, %c0_56] : memref<1x32x32xbf16, #tpu.memory_space<vmem>>, vector<1x32x32xbf16>
    %114 = vector.shape_cast %113 : vector<1x32x32xbf16> to vector<32x32xbf16>
    %cst_57 = arith.constant dense<0.000000e+00> : vector<8x32xf32>
    %115 = tpu.matmul %112, %114, %cst_57 {dimension_numbers = #tpu.dot_dimension_numbers<[1], [0], [0], [1], [0, 0, 1, 1], [], []>} : vector<8x32xbf16>, vector<32x32xbf16>, vector<8x32xf32> -> vector<8x32xf32>
    %116 = arith.addf %111, %115 : vector<8x32xf32>
    %c0_58 = arith.constant 0 : index
    %c0_59 = arith.constant 0 : index
    %c0_60 = arith.constant 0 : index
    %117 = vector.load %arg12[%c0_58, %c0_59, %c0_60] : memref<1x8x32xf32, #tpu.memory_space<vmem>>, vector<1x8x32xf32>
    %118 = vector.shape_cast %117 : vector<1x8x32xf32> to vector<8x32xf32>
    %119 = vector.shape_cast %116 : vector<8x32xf32> to vector<1x8x32xf32>
    tpu.vector_store %arg12[%c0_58, %c0_59, %c0_60], %119 {strides = array<i32>} : memref<1x8x32xf32, #tpu.memory_space<vmem>>, vector<1x8x32xf32>,
    return
  }
  func.func @transform_0(%arg0: i32, %arg1: i32, %arg2: i32) -> (i32, i32, i32) {
    %c0_i32 = arith.constant 0 : i32
    %c0_i32_0 = arith.constant 0 : i32
    %c0_i32_1 = arith.constant 0 : i32
    return %arg0, %c0_i32, %c0_i32_0 : i32, i32, i32
  }
  func.func @transform_1(%arg0: i32, %arg1: i32, %arg2: i32) -> (i32, i32, i32) {
    %c0_i32 = arith.constant 0 : i32
    %c0_i32_0 = arith.constant 0 : i32
    return %arg0, %arg1, %c0_i32 : i32, i32, i32
  }
  func.func @transform_2(%arg0: i32, %arg1: i32, %arg2: i32) -> (i32, i32, i32) {
    %c0_i32 = arith.constant 0 : i32
    %c0_i32_0 = arith.constant 0 : i32
    %c0_i32_1 = arith.constant 0 : i32
    return %arg2, %c0_i32, %c0_i32_0 : i32, i32, i32
  }
  func.func @transform_3(%arg0: i32, %arg1: i32, %arg2: i32) -> (i32, i32, i32) {
    %c0_i32 = arith.constant 0 : i32
    %c0_i32_0 = arith.constant 0 : i32
    %c0_i32_1 = arith.constant 0 : i32
    return %arg2, %c0_i32, %c0_i32_0 : i32, i32, i32
  }
  func.func @transform_4(%arg0: i32, %arg1: i32, %arg2: i32) -> (i32, i32, i32) {
    %c0_i32 = arith.constant 0 : i32
    %c0_i32_0 = arith.constant 0 : i32
    %c0_i32_1 = arith.constant 0 : i32
    return %arg2, %c0_i32, %c0_i32_0 : i32, i32, i32
  }
  func.func @transform_5(%arg0: i32, %arg1: i32, %arg2: i32) -> (i32, i32, i32) {
    %c0_i32 = arith.constant 0 : i32
    %c0_i32_0 = arith.constant 0 : i32
    %c0_i32_1 = arith.constant 0 : i32
    return %arg2, %c0_i32, %c0_i32_0 : i32, i32, i32
  }
  func.func @transform_6(%arg0: i32, %arg1: i32, %arg2: i32) -> (i32, i32, i32) {
    %c0_i32 = arith.constant 0 : i32
    %c0_i32_0 = arith.constant 0 : i32
    %c0_i32_1 = arith.constant 0 : i32
    return %arg2, %c0_i32, %c0_i32_0 : i32, i32, i32
  }
  func.func @transform_7(%arg0: i32, %arg1: i32, %arg2: i32) -> (i32, i32, i32) {
    %c0_i32 = arith.constant 0 : i32
    %c0_i32_0 = arith.constant 0 : i32
    %c0_i32_1 = arith.constant 0 : i32
    return %arg2, %c0_i32, %c0_i32_0 : i32, i32, i32
  }
  func.func @transform_8(%arg0: i32, %arg1: i32, %arg2: i32) -> (i32, i32) {
    %c0_i32 = arith.constant 0 : i32
    %c0_i32_0 = arith.constant 0 : i32
    %c0_i32_1 = arith.constant 0 : i32
    return %c0_i32, %c0_i32_0 : i32, i32
  }
  func.func @transform_9(%arg0: i32, %arg1: i32, %arg2: i32) -> (i32, i32, i32) {
    %c0_i32 = arith.constant 0 : i32
    %c0_i32_0 = arith.constant 0 : i32
    return %arg0, %arg1, %c0_i32 : i32, i32, i32
  }
  func.func @transform_10(%arg0: i32, %arg1: i32, %arg2: i32) -> (i32, i32, i32, i32) {
    %c0_i32 = arith.constant 0 : i32
    %c0_i32_0 = arith.constant 0 : i32
    return %arg0, %arg2, %arg1, %c0_i32 : i32, i32, i32, i32
  }
}

</mosaic_0001>

<bundles_post_ra>
// kernel: tpu_custom_call.1
= control target key start
LH: loop header
LB: loop body
LE: loop exit
PB: predicated region body
PF: predicated region fallthrough
CT: control target
= control target key end

     0   :  { %s2723_s0 = inlined_call_operand.hbm [shape: bf16[2,8,32], index: 0, kind: input, shape index: {}]   ;;  %s2724_s1 = inlined_call_operand.hbm [shape: bf16[2,8,32], index: 1, kind: input, shape index: {}]   ;;  %s2725_s2 = inlined_call_operand.hbm [shape: bf16[1,32,32], index: 2, kind: input, shape index: {}]   ;;  %s2726_s3 = inlined_call_operand.vmem [shape: f32[1,1,32], index: 3, kind: input, shape index: {}]   ;;  %s2727_s4 = inlined_call_operand.hbm [shape: bf16[1,32,32], index: 4, kind: input, shape index: {}]   ;;  %s2728_s5 = inlined_call_operand.vmem [shape: bf16[1,32,32], index: 5, kind: input, shape index: {}]   ;;  %s2729_s6 = inlined_call_operand.vmem [shape: f32[1,1,32], index: 6, kind: input, shape index: {}]   ;;  %s2730_s7 = inlined_call_operand.hbm [shape: bf16[1,32,32], index: 7, kind: input, shape index: {}]   ;;  %s2731_s8 = inlined_call_operand.vmem [shape: f32[1,32], index: 8, kind: input, shape index: {}]   ;;  %s2732_s9 = inlined_call_operand.hbm [shape: f32[2,8,32], index: 9, kind: output, shape index: {0}]   ;;  %s2733_s10 = inlined_call_operand.hbm [shape: bf16[2,4,8,8], index: 10, kind: output, shape index: {1}]  }
   0x1   :  { %2743 = sst [smem:[#allocation26_spill]] %s2725_s2 }
   0x2   :  { %2744 = sst [smem:[#allocation27_spill]] %s2727_s4 }
   0x3   :  { %2745 = sst [smem:[#allocation28_spill]] %s2730_s7 }
   0x4   :  { %2746 = sst [smem:[#allocation29_spill]] %s2731_s8 }
   0x5   :  { %2747 = sst [smem:[#allocation30_spill]] %s2732_s9 }
   0x6   :  { %2748 = sst [smem:[#allocation31_spill]] %s2733_s10 }
   0x7   :  { %16 = vsyncpa [#allocation6], 0 }
   0x8   :  { %18 = vsyncpa [#allocation6 + $0x1], 0 }
   0x9   :  { %19 = vsyncpa [#allocation9], 0 }
   0xa   :  { %21 = vsyncpa [#allocation9 + $0x1], 0 }
   0xb   :  { %22 = vsyncpa [#allocation12], 0 }
   0xc   :  { %23 = vsyncpa [#allocation7], 0 }
   0xd   :  { %25 = vsyncpa [#allocation7 + $0x1], 0 }
   0xe   :  { %26 = vsyncpa [#allocation16], 0 }
   0xf   :  { %28 = vsyncpa [#allocation16 + $0x1], 0  ;;  %s2256_s13 = smov 0   ;;  %s2258_s14 = smov 0  }
  0x10   :  { %s2260_s15 = smov 0   ;;  %s2262_s16 = smov 0  }
  0x11   :  { %s2264_s17 = smov 0   ;;  %s2266_s18 = smov 0  }
  0x12 LB: > { %2749 = sst [smem:[#allocation23_spill]] %s2160_s13  ;;  %s2287_s19 = sadd.s32 4294967295, %s2180_s18   ;;  %s2180_s18 = sphi %s2266_s18, %s34_s18   ;;  %s2176_s17 = sphi %s2264_s17, %s2782_s17   ;;  %s2172_s16 = sphi %s2262_s16, %s2781_s16   ;;  %s2168_s15 = sphi %s2260_s15, %s2780_s15   ;;  %s2164_s14 = sphi %s2258_s14, %s2779_s14   ;;  %s2160_s13 = sphi %s2256_s13, %s2778_s13  }
  0x13   : > { %2750 = sst [smem:[#allocation24_spill]] %s2172_s16  ;;  %s1598_s20 = sadd.s32 4294967294, %s2180_s18  }
  0x14   : > { %p73_p0 = scmp.ne.s32.totalorder %s2164_s14, %s2160_s13  ;;  %p2736_p1 = scmp.eq.s32.totalorder %s2287_s19, 0 }
  0x15   : > { %p310_p3 = scmp.eq.s32.totalorder %s1598_s20, 1  ;;  %p1599_p5 = scmp.ge.s32.totalorder %s2180_s18, 1 }
  0x16   : > { %p2296_p4 = por %p2736_p1, %p73_p0  ;;  %p347_p7 = scmp.lt.s32.totalorder %s2180_s18, 3 }
  0x17   : > { %p2301_p6 = por %p310_p3, %p73_p0  ;;  %s2182_s24 = smov [#allocation10]  }
  0x18   : > { %s2751_s21 = scalar_select %p2296_p4, 1, 0 }
  0x19   : > { %s2752_s22 = scalar_select %p2301_p6, 1, 0 }
  0x1a   : > { %p2306_p8 = pnand %p1599_p5, %p347_p7  ;;  %s362_s25 = sshll.u32 %s2182_s24, 4  ;;  %s2310_s25 = int_to_ptr.vmem [resolvable:$true] %s362_s25 }
  0x1b   : > { %2753 = sst [smem:[#allocation25_spill]] %s2752_s22  ;;  %s2183_s27 = smov [#allocation11]  }
  0x1c   : > { %s2754_s23 = scalar_select %p2306_p8, 1, 0 }
  0x1d   : > { %p1789_p9 = pneg %p2306_p8  ;;  %s384_s28 = sshll.u32 %s2183_s27, 4  ;;  %s2321_s28 = int_to_ptr.vmem [resolvable:$true] %s384_s28 }
  0x1e   : > { %s2184_s29 = smov [#allocation13]   ;;  %s2756_s2 = sld [smem:[#allocation26_spill]] }
  0x1f   : > { %p2317_p11 = pnand %p1789_p9, %p2736_p1  ;;  %s2323_s30 = sshll.u32 %s2184_s29, 4  ;;  %s415_s30 = int_to_ptr.vmem [resolvable:$true] %s2323_s30 }
  0x21   : > { %p2333_p13 = pneg %p2317_p11 }
  0x24   : > { %s1910_s20 = scalar_lea.hbm %s2756_s2, 256 }
  0x25   : > { %p1911_p12 = scmp.ne.s32.totalorder %s2756_s2, %s1910_s20  ;;  %p1917_p5 = scmp.lt.u32.totalorder %s1910_s20, %s2756_s2 }
  0x27   : > { %p1913_p0 = pnand %p2333_p13, %p1911_p12 }
  0x29   : > { %p1914_p3 = pneg %p1913_p0 }
  0x2b   : > { %p1919_p7 = pnand %p1917_p5, %p1914_p3 }
  0x2d   : > { %1922 = shalt.err (!%p1919_p7)
}
  0x2e   : > { %s1923_s22 = scalar_lea.vmem %s2310_s25, 256  ;;  %p1931_p2 = scmp.lt.s32.totalorder %s2310_s25, %s2310_s25 }
  0x2f   : > { %p1924_p9 = scmp.ne.s32.totalorder %s2310_s25, %s1923_s22  ;;  %p1932_p6 = scmp.lt.s32.totalorder %s1923_s22, %s1923_s22 }
  0x31   : > { %p1926_p10 = pnand %p1924_p9, %p2333_p13  ;;  %p1933_p12 = por %p1932_p6, %p1931_p2 }
  0x33   : > { %p1927_p1 = pneg %p1926_p10 }
  0x35   : > { %p1934_p0 = pnand %p1933_p12, %p1927_p1 }
  0x37   : > { %1937 = shalt.err (!%p1934_p0)
}
  0x38   : > { %s2185_s11 = smov 64   ;;  %s2186_s12 = smov 4  }
  0x39   : > { %1792 = dma.hbm_to_vmem [thread:$0]  (!%p2317_p11), %s2756_s2, 256, %s2310_s25, [#allocation9], %s2185_s11, %s2185_s11, %s2186_s12  }
  0x3a   : > { %s2758_s4 = sld [smem:[#allocation27_spill]] }
  0x40   : > { %s1938_s22 = scalar_lea.hbm %s2758_s4, 256 }
  0x41   : > { %p1939_p1 = scmp.ne.s32.totalorder %s2758_s4, %s1938_s22  ;;  %p1945_p10 = scmp.lt.u32.totalorder %s1938_s22, %s2758_s4 }
  0x43   : > { %p1941_p2 = pnand %p1939_p1, %p2333_p13 }
  0x45   : > { %p1942_p6 = pneg %p1941_p2 }
  0x47   : > { %p1947_p3 = pnand %p1945_p10, %p1942_p6 }
  0x49   : > { %1950 = shalt.err (!%p1947_p3)
}
  0x4a   : > { %s1951_s25 = scalar_lea.vmem %s2321_s28, 256  ;;  %p1959_p12 = scmp.lt.s32.totalorder %s2321_s28, %s2321_s28 }
  0x4b   : > { %p1952_p5 = scmp.ne.s32.totalorder %s2321_s28, %s1951_s25  ;;  %p1960_p0 = scmp.lt.s32.totalorder %s1951_s25, %s1951_s25 }
  0x4d   : > { %p1954_p7 = pnand %p1952_p5, %p2333_p13  ;;  %p1961_p1 = por %p1960_p0, %p1959_p12 }
  0x4f   : > { %p1955_p9 = pneg %p1954_p7 }
  0x51   : > { %p1962_p2 = pnand %p1961_p1, %p1955_p9 }
  0x53   : > { %1965 = shalt.err (!%p1962_p2)
}
  0x54   : > { %1795 = dma.hbm_to_vmem [thread:$0]  (!%p2317_p11), %s2758_s4, 256, %s2321_s28, [#allocation12], %s2185_s11, %s2185_s11, %s2186_s12  }
  0x55   : > { %s2759_s7 = sld [smem:[#allocation28_spill]] }
  0x5b   : > { %s1966_s20 = scalar_lea.hbm %s2759_s7, 256 }
  0x5c   : > { %p1967_p6 = scmp.ne.s32.totalorder %s2759_s7, %s1966_s20  ;;  %p1973_p5 = scmp.lt.u32.totalorder %s1966_s20, %s2759_s7 }
  0x5e   : > { %p1969_p10 = pnand %p1967_p6, %p2333_p13 }
  0x60   : > { %p1970_p3 = pneg %p1969_p10 }
  0x62   : > { %p1975_p7 = pnand %p1973_p5, %p1970_p3 }
  0x64   : > { %1978 = shalt.err (!%p1975_p7)
}
  0x65   : > { %s1979_s25 = scalar_lea.vmem %s415_s30, 256  ;;  %p1987_p1 = scmp.lt.s32.totalorder %s415_s30, %s415_s30 }
  0x66   : > { %p1980_p9 = scmp.ne.s32.totalorder %s415_s30, %s1979_s25  ;;  %p1988_p2 = scmp.lt.s32.totalorder %s1979_s25, %s1979_s25 }
  0x68   : > { %p1982_p12 = pnand %p1980_p9, %p2333_p13  ;;  %p1989_p4 = por %p1988_p2, %p1987_p1 }
  0x6a   : > { %p1983_p0 = pneg %p1982_p12 }
  0x6c   : > { %p1990_p8 = pnand %p1989_p4, %p1983_p0 }
  0x6e   : > { %1993 = shalt.err (!%p1990_p8)
}
  0x6f   : > { %1798 = dma.hbm_to_vmem [thread:$0]  (!%p2317_p11), %s2759_s7, 256, %s415_s30, [#allocation12], %s2185_s11, %s2185_s11, %s2186_s12  }
  0x70   : > { %s60_s13 = sadd.s32 1, %s2168_s15  ;;  %s53_s26 = sadd.s32 1, %s2176_s17 }
  0x71   : > { %p67_p4 = scmp.ne.s32.totalorder %s2168_s15, %s2164_s14  ;;  %p55_p8 = scmp.ge.s32.totalorder %s53_s26, 2 }
  0x72   : > { %p68_p13 = scmp.eq.s32.totalorder %s2180_s18, 0  ;;  %p2760_p6 = scmp.eq.s32.totalorder %s2287_s19, 1 }
  0x73   : > { %p1816_p3 = scmp.lt.s32.totalorder %s2180_s18, 2  ;;  %s2784_s26 = smov (%p55_p8, %s53_s26), 0 }
  0x74   : > { %p2412_p10 = por %p2760_p6, %p67_p4  ;;  %p69_p5 = por %p68_p13, %p67_p4 }
  0x75   : > { %s431_s10 = sand.u32 1, %s2168_s15   ;;  %s57_s16 = ssub.s32 %s2176_s17, %s2784_s26 }
  0x76   : > { %s2761_s9 = scalar_select %p2412_p10, 1, 0 }
  0x77   : > { %p58_p11 = scmp.eq.s32.totalorder %s57_s16, 0  ;;  %s2422_s30 = sshll.u32 %s431_s10, 2 }
  0x78   : > { %s1608_s11 = sshll.u32 %s2176_s17, 6  ;;  %s435_s29 = scalar_lea.vmem [#allocation5], %s2422_s30 }
  0x79   : > { %s2426_s12 = scalar_select %p58_p11, %s2168_s15, %s60_s13  }
  0x7a   : > { %s2431_s27 = scalar_lea.hbm %s2723_s0, %s1608_s11  ;;  %s442_s22 = sshll.u32 %s435_s29, 4  ;;  %s2434_s22 = int_to_ptr.vmem [resolvable:$true] %s442_s22 }
  0x7b   : > { %p2438_p7 = pnand %p1816_p3, %p69_p5  ;;  %s2445_s13 = scalar_lea.hbm %s2724_s1, %s1608_s11 }
  0x7c   : > { %s449_s16 = sand.u32 1, %s2180_s18   ;;  %s432_s20 = scalar_lea.sflag [#allocation6], %s431_s10 }
  0x7d   : > { %s1994_s24 = scalar_lea.hbm %s2431_s27, 64  ;;  %p1996_p12 = pneg %p2438_p7 }
  0x7e   : > { %p1995_p9 = scmp.ne.s32.totalorder %s2431_s27, %s1994_s24  ;;  %s1999_s4 = scalar_lea.hbm %s2723_s0, 128 }
  0x7f   : > { %p2000_p2 = scmp.lt.u32.totalorder %s2431_s27, %s2723_s0  ;;  %p2001_p4 = scmp.lt.u32.totalorder %s1999_s4, %s1994_s24 }
  0x80   : > { %p1997_p0 = pnand %p1996_p12, %p1995_p9  ;;  %p2003_p13 = scmp.lt.u32.totalorder %s1994_s24, %s2431_s27 }
  0x81   : > { %p2002_p8 = por %p2001_p4, %p2000_p2 }
  0x82   : > { %p1998_p1 = pneg %p1997_p0 }
  0x83   : > { %p2004_p6 = por %p2003_p13, %p2002_p8 }
  0x85   : > { %p2005_p3 = pnand %p2004_p6, %p1998_p1 }
  0x87   : > { %2008 = shalt.err (!%p2005_p3)
}
  0x88   : > { %s2009_s10 = scalar_lea.vmem %s2434_s22, 64  ;;  %s2187_s2 = smov [#allocation5]  }
  0x89   : > { %p2010_p5 = scmp.ne.s32.totalorder %s2434_s22, %s2009_s10  ;;  %s2014_s11 = sshll.u32 %s2187_s2, 4  ;;  %s2015_s11 = int_to_ptr.vmem [resolvable:$false] %s2014_s11 }
  0x8a   : > { %s2016_s7 = scalar_lea.vmem %s2015_s11, 128  ;;  %p2017_p0 = scmp.lt.s32.totalorder %s2434_s22, %s2015_s11 }
  0x8b   : > { %p2012_p11 = pnand %p2010_p5, %p1996_p12  ;;  %p2018_p2 = scmp.lt.s32.totalorder %s2016_s7, %s2009_s10 }
  0x8d   : > { %p2013_p9 = pneg %p2012_p11  ;;  %p2019_p4 = por %p2018_p2, %p2017_p0 }
  0x8f   : > { %p2020_p8 = pnand %p2019_p4, %p2013_p9 }
  0x91   : > { %2023 = shalt.err (!%p2020_p8)
}
  0x92   : > { %1802 = dma.hbm_to_vmem [thread:$0]  (!%p2438_p7), %s2431_s27, 64, %s2434_s22, %s432_s20  }
  0x93   : > { %s453_s4 = scalar_lea.vmem [#allocation8], %s2422_s30  ;;  %s450_s24 = scalar_lea.sflag [#allocation9], %s449_s16 }
  0x94   : > { %s461_s8 = sshll.u32 %s453_s4, 4  ;;  %s2024_s29 = scalar_lea.hbm %s2445_s13, 64  ;;  %s462_s8 = int_to_ptr.vmem [resolvable:$true] %s461_s8 }
  0x95   : > { %p2025_p1 = scmp.ne.s32.totalorder %s2445_s13, %s2024_s29  ;;  %s2029_s2 = scalar_lea.hbm %s2724_s1, 128 }
  0x96   : > { %p2030_p3 = scmp.lt.u32.totalorder %s2445_s13, %s2724_s1  ;;  %p2031_p5 = scmp.lt.u32.totalorder %s2029_s2, %s2024_s29 }
  0x97   : > { %p2027_p13 = pnand %p2025_p1, %p1996_p12  ;;  %p2033_p9 = scmp.lt.u32.totalorder %s2024_s29, %s2445_s13 }
  0x98   : > { %p2032_p11 = por %p2031_p5, %p2030_p3 }
  0x99   : > { %p2028_p6 = pneg %p2027_p13 }
  0x9a   : > { %p2034_p0 = por %p2033_p9, %p2032_p11 }
  0x9c   : > { %p2035_p2 = pnand %p2034_p0, %p2028_p6 }
  0x9e   : > { %2038 = shalt.err (!%p2035_p2)
}
  0x9f   : > { %s2039_s30 = scalar_lea.vmem %s462_s8, 64  ;;  %s2188_s27 = smov [#allocation8]  }
  0xa0   : > { %p2040_p4 = scmp.ne.s32.totalorder %s462_s8, %s2039_s30  ;;  %s2044_s22 = sshll.u32 %s2188_s27, 4  ;;  %s2045_s22 = int_to_ptr.vmem [resolvable:$false] %s2044_s22 }
  0xa1   : > { %s2046_s16 = scalar_lea.vmem %s2045_s22, 128  ;;  %p2047_p13 = scmp.lt.s32.totalorder %s462_s8, %s2045_s22 }
  0xa2   : > { %p2042_p8 = pnand %p2040_p4, %p1996_p12  ;;  %p2048_p10 = scmp.lt.s32.totalorder %s2046_s16, %s2039_s30 }
  0xa4   : > { %p2043_p1 = pneg %p2042_p8  ;;  %p2049_p3 = por %p2048_p10, %p2047_p13 }
  0xa6   : > { %p2050_p5 = pnand %p2049_p3, %p2043_p1 }
  0xa8   : > { %2053 = shalt.err (!%p2050_p5)
}
  0xa9   : > { %1805 = dma.hbm_to_vmem [thread:$0]  (!%p2438_p7), %s2445_s13, 64, %s462_s8, %s450_s24  }
  0xaa   : > { %p2763_p6 = scmp.ne.s32.totalorder %s2754_s23, 0 }
  0xab   : > { %s2498_s20 = sand.u32 (!%p2763_p6), 1, %s2164_s14   ;;  %p2764_p12 = scmp.ne.s32.totalorder (!%p2763_p6), %s2751_s21, 0 }
  0xac   : > { %470 = sbr.rel (%p2763_p6) target bundleno = 1657 (0x679), region = 56  ;;  %s1612_s4 = sshll.u32 (!%p2763_p6), %s2498_s20, 2 }
  0xad   : > { %s473_s29 = scalar_lea.sflag (!%p2763_p6), [#allocation6], %s2498_s20  ;;  %s476_s28 = scalar_lea.vmem (!%p2763_p6), [#allocation5], %s1612_s4 }
  0xb3   : > { %2135 = dma.done.wait (%p2764_p12), %s473_s29, 64  }
  0xb4   : > { %2137 = vsyncadd (%p2764_p12), %s473_s29, 4294967232  ;;  %s481_s25 = sand.u32 1, %s2287_s19   ;;  %s2507_s23 = scalar_lea.vmem [#allocation8], %s1612_s4 }
  0xb5   : > { %s482_s13 = scalar_lea.sflag [#allocation9], %s481_s25 }
  0xb6   : > { %2139 = dma.done.wait (%p2764_p12), %s482_s13, 64  }
  0xb7   : > { %2141 = vsyncadd (%p2764_p12), %s482_s13, 4294967232  ;;  %p2765_p10 = scmp.eq.s32.totalorder %s2287_s19, 0 }
  0xb9   : > { %2143 = dma.done.wait (%p2765_p10), [#allocation9], 256   ;;  %p2766_p7 = pmov %p2765_p10 }
  0xbb   : > { %2145 = vsyncadd (%p2766_p7), [#allocation9], 4294967040  ;;  %p2767_p11 = pmov %p2766_p7 }
  0xbc   : > { %p2768_p9 = pmov %p2766_p7 }
  0xbd   : > { %2147 = dma.done.wait (%p2767_p11), [#allocation12], 512  }
  0xbe   : > { %2149 = vsyncadd (%p2768_p9), [#allocation12], 4294966784  ;;  %v2189_v0 = vmov 0.0   ;;  %vm2190_vm0 = vmmov 0   ;;  %v1884_v1 = vld [vmem:[#allocation11] sm:$0xff]   ;;  %v1885_v2 = vld [vmem:[#allocation11 + $0x8] sm:$0xff]  }
  0xbf   : > { %1689 = vmatprep.subr.bf16.mxu0 %v2189_v0  ;;  %1693 = vmatprep.mubr.msk.bf16.mxu0 %vm2190_vm0, %v2189_v0  ;;  %v572_v3 = vld [vmem:[%s476_s28] sm:$0xf]  ;;  %v1886_v4 = vld [vmem:[#allocation10] sm:$0xff]   ;;  %vm589_vm1 = vcmask 261120   ;;  %v1887_v6 = vld [vmem:[#allocation10 + $0x8] sm:$0xff]   ;;  %vm636_vm2 = vcmask 257024  }
  0xc0   : > { %1697 = vmatprep.subr.bf16.mxu1 %v2189_v0  ;;  %1701 = vmatprep.mubr.msk.bf16.mxu1 %vm2190_vm0, %v2189_v0  ;;  %v1888_v5 = vld [vmem:[%s2728_s5] sm:$0xff]   ;;  %v1889_v8 = vld [vmem:[%s2728_s5 + $0x8] sm:$0xff]   ;;  %vm780_vm3 = vcmask 64512   ;;  %s2191_s11 = smov 112   ;;  %s2192_s7 = smov 120   ;;  %vm844_vm4 = vcmask 1043456  }
  0xc1   : > { %1690 = vmatpush3.bf16.msra.mxu0 %v1884_v1  ;;  %1698 = vmatpush3.bf16.msra.mxu1 %v1888_v5  ;;  %v711_v7 = vld [vmem:[%s2507_s23] sm:$0xf]  ;;  %v1626_v14 = vld [vmem:[%s2726_s3] ss:$0 sm:$0xff]  ;;  %s2193_s30 = smov 104   ;;  %s1618_s16 = sshll.u32 %s2498_s20, 4 }
  0xc2   : > { %1691 = vmatprep.subr.bf16.mxu0 %v2189_v0  ;;  %1699 = vmatprep.subr.bf16.mxu1 %v2189_v0  ;;  %v1622_v24 = vld [vmem:[%s2729_s6] ss:$0 sm:$0xff]  ;;  %vm839_vm5 = vcmask 60416   ;;  %s2599_s4 = scalar_lea.vmem [#allocation15], %s1618_s16  ;;  %s2194_s29 = smov 8   ;;  %vm1016_vm6 = vcmask 126016  }
  0xc3   : > { %s2195_s28 = smov 16   ;;  %s1617_s25 = sshll.u32 %s2498_s20, 3  ;;  %vm1137_vm7 = vcmask 191616   ;;  %vm1258_vm8 = vcmask 257216  }
  0xc4   : > { %s2769_s19 = sld [smem:[#allocation29_spill]]  ;;  %s2628_s21 = scalar_lea.vmem [#allocation14], %s1617_s25 }
  0xc5   : > { %1692 = vmatpush3.bf16.msra.mxu0 %v1885_v2  ;;  %1700 = vmatpush3.bf16.msra.mxu1 %v1889_v8  ;;  %s2770_s8 = sld [smem:[#allocation24_spill]]  ;;  %s2196_s24 = smov 24  }
  0xc6   : > { %1705 = vmatprep.subr.bf16.mxu0 %v2189_v0  ;;  %1713 = vmatprep.subr.bf16.mxu1 %v2189_v0  ;;  %s1371_s2 = sshll.u32 %s2599_s4, 4  ;;  %s1341_s22 = scalar_lea.sflag [#allocation16], %s2498_s20  ;;  %s2640_s2 = int_to_ptr.vmem [resolvable:$true] %s1371_s2 }
  0xc7   : > { %s2054_s16 = scalar_lea.vmem %s2640_s2, 256  ;;  %p2772_p2 = scmp.ne.s32.totalorder %s2761_s9, 0 }
  0xc8   : > { %1694 = vmatmul.mubr.msk.bf16.vlgmr.msra.gmra.mrb[0].mxu0 %vm589_vm1, %v572_v3  ;;  %1702 = vmatmul.mubr.msk.bf16.vlgmr.msra.gmra.mrb[0].mxu1 %vm589_vm1, %v572_v3  ;;  %p2055_p0 = scmp.ne.s32.totalorder %s2640_s2, %s2054_s16 }
  0xc9   : > { %1706 = vmatpush3.bf16.msra.mxu0 %v1886_v4  ;;  %1709 = vmatprep.mubr.msk.bf16.mxu0 %vm2190_vm0, %v2189_v0 }
  0xca   : > { %1707 = vmatprep.subr.bf16.mxu0 %v2189_v0  ;;  %1715 = vmatprep.mubr.msk.bf16.mxu1 %vm2190_vm0, %v2189_v0  ;;  %p2056_p4 = pnand %p2055_p0, %p2772_p2 }
  0xcb   : > { %s1660_s10 = sshll.u32 %s2770_s8, 8 }
  0xcc   : > { %p2057_p8 = pneg %p2056_p4 }
  0xcd   : > { %1708 = vmatpush3.bf16.msra.mxu0 %v1887_v6 }
  0xce   : > { %1719 = vmatprep.subr.bf16.mxu0 %v2189_v0 }
  0xd0   : > { %1710 = vmatmul.mubr.msk.bf16.vlgmr.msra.gmra.mrb[4].mxu0 %vm589_vm1, %v711_v7 }
  0xd1   : > { %1721 = vmatprep.mubr.msk.bf16.mxu0 %vm2190_vm0, %v2189_v0 }
 0x19b   : > { %v627_v9 = vpop.f32.mrb[0].mxu0  ;;  %v695_v25 = vpop.f32.mrb[0].mxu1 }
 0x19c   : > { %v633_v10 = vpack.c.bf16 %v627_v9, %v627_v9  ;;  %v1695_v11 = vpop.f32.mrb[1].mxu0  ;;  %v696_v26 = vadd.f32 %v1622_v24, %v695_v25  ;;  %v1703_v27 = vpop.f32.mrb[1].mxu1 }
 0x19d   : > { %v630_v12 = vpop.f32.mrb[2].mxu0  ;;  %v698_v28 = vpop.f32.mrb[2].mxu1 }
 0x19e   : > { %637 = vst.msk [vmem:[#allocation2] sm:$0xf] %vm636_vm2, %v633_v10  ;;  %v1696_v13 = vpop.f32.mrb[3].mxu0  ;;  %v701_v29 = vpack.c.bf16 %v696_v26, %v696_v26  ;;  %v1704_v30 = vpop.f32.mrb[3].mxu1 }
 0x1a0   : > { %704 = vst.msk [vmem:[#allocation3] sm:$0xf] %vm636_vm2, %v701_v29 }
 0x1a3   : > { %v773_v15 = vpop.f32.mrb[4].mxu0 }
 0x1a4   : > { %v774_v16 = vadd.f32 %v1626_v14, %v773_v15  ;;  %v1711_v17 = vpop.f32.mrb[5].mxu0 }
 0x1a5   : > { %v707_v18 = vld [vmem:[#allocation2] sm:$0xf]  ;;  %v776_v19 = vpop.f32.mrb[6].mxu0 }
 0x1a6   : > { %v785_v20 = vsel %vm780_vm3, %v707_v18, 0  ;;  %v1632_v21 = vcombine.low %v707_v18, %v707_v18  ;;  %v1712_v22 = vpop.f32.mrb[7].mxu0  ;;  %v779_v23 = vpack.c.bf16 %v774_v16, %v774_v16 }
 0x1a7   : > { %1714 = vmatpush3.bf16.xpose.msra.mxu1 %v785_v20  ;;  %v710_v31 = vld [vmem:[#allocation3] sm:$0xf] }
 0x1a8   : > { %1020 = vrot.lane.b32.xlu1 %v1632_v21, %s2191_s11  ;;  %896 = vrot.lane.b32.xlu0 %v1632_v21, %s2192_s7  ;;  %v846_v32 = vsel %vm844_vm4, %v710_v31, 0  ;;  %v1635_v4 = vcombine.low %v710_v31, %v710_v31 }
 0x1a9   : > { %1725 = vmatprep.subr.bf16.mxu1 %v2189_v0  ;;  %1720 = vmatpush3.bf16.msra.mxu0 %v846_v32 }
 0x1aa   : > { %1731 = vmatprep.subr.bf16.mxu0 %v2189_v0 }
 0x1ac   : > { %1018 = vrot.lane.b32.xlu1 %v779_v23, %s2191_s11  ;;  %891 = vrot.lane.b32.xlu0 %v779_v23, %s2192_s7 }
 0x1ae   : > { %1716 = vmatmul.mubr.msk.bf16.vlgmr.msra.gmra.mrb[4].mxu1 %vm780_vm3, %v779_v23 }
 0x1af   : > { %1727 = vmatprep.mubr.msk.bf16.mxu1 %vm2190_vm0, %v2189_v0 }
 0x1b0   : > { %1139 = vrot.lane.b32.xlu1 %v779_v23, %s2193_s30  ;;  %1141 = vrot.lane.b32.xlu0 %v1632_v21, %s2193_s30 }
 0x21a   : > { %v897_v33 = vpop.permute.xlu0 %896  ;;  %v1021_v35 = vpop.permute.xlu1 %1020 }
 0x21b   : > { %v902_v34 = vsel %vm780_vm3, %v897_v33, 0  ;;  %v1026_v37 = vsel %vm780_vm3, %v1021_v35, 0 }
 0x21c   : > { %1726 = vmatpush3.bf16.xpose.msra.mxu1 %v902_v34 }
 0x21d   : > { %1737 = vmatprep.subr.bf16.mxu1 %v2189_v0 }
 0x21e   : > { %v892_v36 = vpop.permute.xlu0 %891  ;;  %v1019_v39 = vpop.permute.xlu1 %1018 }
 0x222   : > { %v1142_v38 = vpop.permute.xlu0 %1141  ;;  %v1140_v41 = vpop.permute.xlu1 %1139 }
 0x223   : > { %1728 = vmatmul.mubr.msk.bf16.vlgmr.msra.gmra.mrb[8].mxu1 %vm780_vm3, %v892_v36  ;;  %v1147_v40 = vsel %vm780_vm3, %v1142_v38, 0 }
 0x224   : > { %1738 = vmatpush3.bf16.xpose.msra.mxu1 %v1026_v37  ;;  %1739 = vmatprep.mubr.msk.bf16.mxu1 %vm2190_vm0, %v2189_v0 }
 0x225   : > { %1749 = vmatprep.subr.bf16.mxu1 %v2189_v0 }
 0x22b   : > { %1740 = vmatmul.mubr.msk.bf16.vlgmr.msra.gmra.mrb[12].mxu1 %vm780_vm3, %v1019_v39 }
 0x22c   : > { %1750 = vmatpush3.bf16.xpose.msra.mxu1 %v1147_v40  ;;  %1751 = vmatprep.mubr.msk.bf16.mxu1 %vm2190_vm0, %v2189_v0 }
 0x22d   : > { %1761 = vmatprep.subr.bf16.mxu1 %v2189_v0 }
 0x233   : > { %1752 = vmatmul.mubr.msk.bf16.vlgmr.msra.gmra.mrb[16].mxu1 %vm780_vm3, %v1140_v41 }
 0x234   : > { %1765 = vmatprep.mubr.msk.bf16.mxu1 %vm2190_vm0, %v2189_v0 }
 0x281   : > { %v821_v42 = vpop.f32.mrb[4].mxu1 }
 0x282   : > { %v1717_v43 = vpop.f32.mrb[5].mxu1  ;;  %v827_v44 = vsel %vm780_vm3, %v821_v42, -inf }
 0x283   : > { %828 = vmax.xlane.f32.xlu0 %v827_v44  ;;  %v824_v45 = vpop.f32.mrb[6].mxu1 }
 0x284   : > { %v1718_v46 = vpop.f32.mrb[7].mxu1 }
 0x2f6   : > { %v938_v47 = vpop.f32.mrb[8].mxu1 }
 0x2f7   : > { %v1729_v48 = vpop.f32.mrb[9].mxu1  ;;  %v944_v49 = vsel %vm780_vm3, %v938_v47, -inf }
 0x2f8   : > { %945 = vmax.xlane.f32.xlu1 %v944_v49  ;;  %v941_v50 = vpop.f32.mrb[10].mxu1 }
 0x2f9   : > { %v1730_v51 = vpop.f32.mrb[11].mxu1 }
 0x2fe   : > { %v1062_v52 = vpop.f32.mrb[12].mxu1 }
 0x2ff   : > { %v1741_v53 = vpop.f32.mrb[13].mxu1  ;;  %v1068_v54 = vsel %vm780_vm3, %v1062_v52, -inf }
 0x300   : > { %1069 = vmax.xlane.f32.xlu0 %v1068_v54  ;;  %v1065_v55 = vpop.f32.mrb[14].mxu1  ;;  %v1893_v54 = vld [vmem:[#allocation13 + $0x8] sm:$0xff]  }
 0x301   : > { %v1742_v56 = vpop.f32.mrb[15].mxu1 }
 0x306   : > { %v1183_v57 = vpop.f32.mrb[16].mxu1 }
 0x307   : > { %v1753_v58 = vpop.f32.mrb[17].mxu1  ;;  %v1189_v59 = vsel %vm780_vm3, %v1183_v57, -inf }
 0x308   : > { %1190 = vmax.xlane.f32.xlu0 %v1189_v59  ;;  %v1186_v60 = vpop.f32.mrb[18].mxu1  ;;  %v1646_v59 = vld [vmem:[%s2769_s19] ss:$0 sm:$0xff] }
 0x309   : > { %v1754_v61 = vpop.f32.mrb[19].mxu1  ;;  %1271 = vst.msk [vmem:[%s2628_s21] sm:$0xff] %vm589_vm1, %v1646_v59 }
 0x310   : > { %v829_v62 = vpop.xlane.xlu0 %828 }
 0x311   : > { %v830_v63 = vsub.f32 %v821_v42, %v829_v62 }
 0x313   : > { %v831_v1 = vmul.f32 1.442695, %v830_v63 }
 0x315   : > { %1894 = vpow2.f32 %v831_v1 }
 0x31f   : > { %v1895_v2 = vpop.eup %1894 }
 0x320   : > { %v833_v3 = vsel %vm780_vm3, %v1895_v2, 0.0 }
 0x321   : > { %834 = vadd.xlane.f32.xlu1 %v833_v3 }
 0x332   : > { %961 = vrot.lane.b32.xlu1 %v1635_v4, %s2192_s7 }
 0x385   : > { %v946_v5 = vpop.xlane.xlu1 %945 }
 0x386   : > { %v947_v6 = vsub.f32 %v938_v47, %v946_v5 }
 0x388   : > { %v948_v7 = vmul.f32 1.442695, %v947_v6 }
 0x38a   : > { %1896 = vpow2.f32 %v948_v7 }
 0x38d   : > { %v1070_v8 = vpop.xlane.xlu0 %1069 }
 0x38e   : > { %v1071_v9 = vsub.f32 %v1062_v52, %v1070_v8  ;;  %v1892_v52 = vld [vmem:[#allocation13] sm:$0xff]  }
 0x38f   : > { %1762 = vmatpush3.bf16.msra.mxu1 %v1892_v52 }
 0x390   : > { %v1072_v10 = vmul.f32 1.442695, %v1071_v9  ;;  %1763 = vmatprep.subr.bf16.mxu1 %v2189_v0 }
 0x392   : > { %1898 = vpow2.f32 %v1072_v10 }
 0x393   : > { %1764 = vmatpush3.bf16.msra.mxu1 %v1893_v54 }
 0x394   : > { %v1897_v11 = vpop.eup %1896 }
 0x395   : > { %v1191_v12 = vpop.xlane.xlu0 %1190  ;;  %v950_v13 = vsel %vm780_vm3, %v1897_v11, 0.0 }
 0x396   : > { %v1192_v14 = vsub.f32 %v1183_v57, %v1191_v12  ;;  %951 = vadd.xlane.f32.xlu0 %v950_v13 }
 0x398   : > { %v1193_v15 = vmul.f32 1.442695, %v1192_v14 }
 0x39a   : > { %1900 = vpow2.f32 %v1193_v15 }
 0x39c   : > { %v1899_v16 = vpop.eup %1898 }
 0x39d   : > { %v1074_v17 = vsel %vm780_vm3, %v1899_v16, 0.0 }
 0x39e   : > { %1075 = vadd.xlane.f32.xlu1 %v1074_v17 }
 0x3a4   : > { %v1901_v18 = vpop.eup %1900 }
 0x3a5   : > { %v1195_v19 = vsel %vm780_vm3, %v1901_v18, 0.0 }
 0x3a6   : > { %1196 = vadd.xlane.f32.xlu0 %v1195_v19 }
 0x3ae   : > { %v835_v20 = vpop.xlane.xlu1 %834 }
 0x3af   : > { %1902 = vrcp.f32 %v835_v20  ;;  %1203 = vrot.lane.b32.xlu1 %v1635_v4, %s2193_s30  ;;  %s2771_s30 = sld [smem:[#allocation31_spill]] }
 0x3b2   : > { %v962_v23 = vpop.permute.xlu1 %961 }
 0x3b3   : > { %v967_v25 = vsel %vm844_vm4, %v962_v23, 0 }
 0x3b5   : > { %s2638_s27 = scalar_lea.hbm %s2771_s30, %s1660_s10 }
 0x3b9   : > { %v1903_v21 = vpop.eup %1902 }
 0x3ba   : > { %v837_v22 = vmul.f32 %v1903_v21, %v1895_v2 }
 0x3bc   : > { %1082 = vrot.lane.b32.xlu0 %v1635_v4, %s2191_s11  ;;  %v838_v24 = vpack.c.bf16 %v837_v22, %v837_v22 }
 0x3be   : > { %1722 = vmatmul.mubr.msk.bf16.vlgmr.msra.gmra.mrb[8].mxu0 %vm780_vm3, %v838_v24  ;;  %840 = vst.msk [vmem:[%s2599_s4] sm:$0xf] %vm839_vm5, %v838_v24 }
 0x3bf   : > { %1732 = vmatpush3.bf16.msra.mxu0 %v967_v25  ;;  %1733 = vmatprep.mubr.msk.bf16.mxu0 %vm2190_vm0, %v2189_v0 }
 0x3c0   : > { %1743 = vmatprep.subr.bf16.mxu0 %v2189_v0 }
 0x423   : > { %v952_v26 = vpop.xlane.xlu0 %951 }
 0x424   : > { %1904 = vrcp.f32 %v952_v26 }
 0x42b   : > { %v1076_v27 = vpop.xlane.xlu1 %1075 }
 0x42c   : > { %1906 = vrcp.f32 %v1076_v27 }
 0x42e   : > { %v1905_v28 = vpop.eup %1904 }
 0x42f   : > { %v954_v29 = vmul.f32 %v1905_v28, %v1897_v11  ;;  %v1204_v36 = vpop.permute.xlu1 %1203 }
 0x430   : > { %v1209_v38 = vsel %vm844_vm4, %v1204_v36, 0 }
 0x431   : > { %v955_v30 = vpack.c.bf16 %v954_v29, %v954_v29 }
 0x433   : > { %1734 = vmatmul.mubr.msk.bf16.vlgmr.msra.gmra.mrb[12].mxu0 %vm780_vm3, %v955_v30  ;;  %v1197_v31 = vpop.xlane.xlu0 %1196  ;;  %1634 = vst.msk [vmem:[%s2599_s4 + $0x4] sm:$0xf] %vm839_vm5, %v955_v30 }
 0x434   : > { %1908 = vrcp.f32 %v1197_v31  ;;  %1745 = vmatprep.mubr.msk.bf16.mxu0 %vm2190_vm0, %v2189_v0 }
 0x436   : > { %v1907_v32 = vpop.eup %1906 }
 0x437   : > { %v1078_v33 = vmul.f32 %v1907_v32, %v1899_v16  ;;  %v1083_v34 = vpop.permute.xlu0 %1082 }
 0x438   : > { %v1088_v35 = vsel %vm844_vm4, %v1083_v34, 0 }
 0x439   : > { %1744 = vmatpush3.bf16.msra.mxu0 %v1088_v35  ;;  %v1079_v37 = vpack.c.bf16 %v1078_v33, %v1078_v33 }
 0x43a   : > { %1755 = vmatprep.subr.bf16.mxu0 %v2189_v0 }
 0x43b   : > { %1639 = vst.msk [vmem:[%s2599_s4 + $0x8] sm:$0xf] %vm839_vm5, %v1079_v37 }
 0x43c   : > { %1746 = vmatmul.mubr.msk.bf16.vlgmr.msra.gmra.mrb[16].mxu0 %vm780_vm3, %v1079_v37 }
 0x43d   : > { %1756 = vmatpush3.bf16.msra.mxu0 %v1209_v38  ;;  %1757 = vmatprep.mubr.msk.bf16.mxu0 %vm2190_vm0, %v2189_v0 }
 0x43e   : > { %v1909_v39 = vpop.eup %1908 }
 0x43f   : > { %v1199_v40 = vmul.f32 %v1909_v39, %v1901_v18 }
 0x441   : > { %v1200_v41 = vpack.c.bf16 %v1199_v40, %v1199_v40 }
 0x443   : > { %1643 = vst.msk [vmem:[%s2599_s4 + $0xc] sm:$0xf] %vm839_vm5, %v1200_v41 }
 0x444   : > { %1758 = vmatmul.mubr.msk.bf16.vlgmr.msra.gmra.mrb[20].mxu0 %vm780_vm3, %v1200_v41 }
 0x491   : > { %v882_v42 = vpop.f32.mrb[8].mxu0 }
 0x492   : > { %v888_v43 = vpack.c.bf16 %v882_v42, %v882_v42  ;;  %v1723_v44 = vpop.f32.mrb[9].mxu0 }
 0x493   : > { %v885_v45 = vpop.f32.mrb[10].mxu0 }
 0x494   : > { %889 = vst.msk [vmem:[#allocation4] sm:$0xf] %vm839_vm5, %v888_v43  ;;  %v1724_v46 = vpop.f32.mrb[11].mxu0 }
 0x506   : > { %v1003_v47 = vpop.f32.mrb[12].mxu0 }
 0x507   : > { %v1657_v48 = vpack.c.bf16 %v1003_v47, %v1003_v47  ;;  %v1735_v49 = vpop.f32.mrb[13].mxu0 }
 0x508   : > { %v1006_v50 = vpop.f32.mrb[14].mxu0 }
 0x509   : > { %1013 = vrot.lane.b32.xlu1 %v1657_v48, %s2194_s29  ;;  %v1736_v51 = vpop.f32.mrb[15].mxu0  ;;  %s2197_s29 = smov [#allocation15]  }
 0x50f   : > { %v1124_v53 = vpop.f32.mrb[16].mxu0 }
 0x510   : > { %v1658_v55 = vpack.c.bf16 %v1124_v53, %v1124_v53  ;;  %v1747_v56 = vpop.f32.mrb[17].mxu0 }
 0x511   : > { %v1127_v57 = vpop.f32.mrb[18].mxu0 }
 0x512   : > { %1134 = vrot.lane.b32.xlu0 %v1658_v55, %s2195_s28  ;;  %v1748_v58 = vpop.f32.mrb[19].mxu0  ;;  %s2058_s28 = sshll.u32 %s2197_s29, 4  ;;  %s2059_s28 = int_to_ptr.vmem [resolvable:$false] %s2058_s28 }
 0x513   : > { %s2060_s4 = scalar_lea.vmem %s2059_s28, 512  ;;  %p2061_p1 = scmp.lt.s32.totalorder %s2640_s2, %s2059_s28 }
 0x514   : > { %p2062_p13 = scmp.lt.s32.totalorder %s2060_s4, %s2054_s16 }
 0x516   : > { %p2063_p3 = por %p2062_p13, %p2061_p1 }
 0x517   : > { %v1245_v60 = vpop.f32.mrb[20].mxu0 }
 0x518   : > { %v1659_v61 = vpack.c.bf16 %v1245_v60, %v1245_v60  ;;  %v1759_v62 = vpop.f32.mrb[21].mxu0  ;;  %p2064_p5 = pnand %p2063_p3, %p2057_p8 }
 0x519   : > { %v1248_v0 = vpop.f32.mrb[22].mxu0 }
 0x51a   : > { %1255 = vrot.lane.b32.xlu1 %v1659_v61, %s2196_s24  ;;  %v1760_v63 = vpop.f32.mrb[23].mxu0 }
 0x57b   : > { %v1014_v1 = vpop.permute.xlu1 %1013 }
 0x57c   : > { %1017 = vst.msk [vmem:[#allocation4] sm:$0xf] %vm1016_vm6, %v1014_v1 }
 0x584   : > { %v1135_v2 = vpop.permute.xlu0 %1134 }
 0x585   : > { %1138 = vst.msk [vmem:[#allocation4] sm:$0xf] %vm1137_vm7, %v1135_v2 }
 0x58c   : > { %v1256_v3 = vpop.permute.xlu1 %1255 }
 0x58d   : > { %1259 = vst.msk [vmem:[#allocation4] sm:$0xf] %vm1258_vm8, %v1256_v3 }
 0x594   : > { %v1273_v4 = vld [vmem:[#allocation4] sm:$0xf] }
 0x595   : > { %1766 = vmatmul.mubr.msk.bf16.vlgmr.msra.gmra.mrb[20].mxu1 %vm589_vm1, %v1273_v4 }
 0x596   : > { %2067 = shalt.err (!%p2064_p5)
}
 0x597   : > { %s2068_s25 = scalar_lea.hbm %s2638_s27, 256  ;;  %s2072_s19 = scalar_lea.hbm %s2771_s30, 512 }
 0x598   : > { %p2069_p6 = scmp.ne.s32.totalorder %s2638_s27, %s2068_s25  ;;  %p2073_p7 = scmp.lt.u32.totalorder %s2638_s27, %s2771_s30 }
 0x599   : > { %p2074_p11 = scmp.lt.u32.totalorder %s2072_s19, %s2068_s25  ;;  %p2076_p0 = scmp.lt.u32.totalorder %s2068_s25, %s2638_s27 }
 0x59a   : > { %p2070_p12 = pnand %p2069_p6, %p2772_p2 }
 0x59b   : > { %p2075_p9 = por %p2074_p11, %p2073_p7 }
 0x59c   : > { %p2071_p10 = pneg %p2070_p12 }
 0x59d   : > { %p2077_p4 = por %p2076_p0, %p2075_p9 }
 0x59f   : > { %p2078_p8 = pnand %p2077_p4, %p2071_p10 }
 0x5a1   : > { %2081 = shalt.err (!%p2078_p8)
}
 0x5a2   : > { %s2198_s11 = smov 64   ;;  %s2199_s7 = smov 4   ;;  %v1272_v5 = vld [vmem:[%s2628_s21] sm:$0xff] }
 0x5a3   : > { %1786 = dma.vmem_to_hbm [thread:$0]  (%p2772_p2), %s2640_s2, 256, %s2638_s27, %s1341_s22, %s2198_s11, %s2198_s11, %s2199_s7  }
 0x5a4   : > { %s1652_s16 = sshll.u32 %s2770_s8, 7  ;;  %s1355_s29 = sshll.u32 %s2628_s21, 4  ;;  %s2674_s29 = int_to_ptr.vmem [resolvable:$true] %s1355_s29 }
 0x5a5   : > { %s2773_s25 = sld [smem:[#allocation30_spill]]  ;;  %s1336_s2 = scalar_lea.sflag [#allocation7], %s2498_s20 }
 0x5a6   : > { %s2082_s8 = scalar_lea.vmem %s2674_s29, 128  ;;  %s2200_s27 = smov [#allocation14]  }
 0x5a7   : > { %p2083_p1 = scmp.ne.s32.totalorder %s2674_s29, %s2082_s8  ;;  %s2086_s22 = sshll.u32 %s2200_s27, 4  ;;  %s2087_s22 = int_to_ptr.vmem [resolvable:$false] %s2086_s22 }
 0x5a8   : > { %s2088_s23 = scalar_lea.vmem %s2087_s22, 256  ;;  %p2089_p5 = scmp.lt.s32.totalorder %s2674_s29, %s2087_s22 }
 0x5a9   : > { %p2084_p13 = pnand %p2083_p1, %p2772_p2  ;;  %p2090_p6 = scmp.lt.s32.totalorder %s2088_s23, %s2082_s8 }
 0x5ab   : > { %s2672_s13 = scalar_lea.hbm %s2773_s25, %s1652_s16  ;;  %p2085_p3 = pneg %p2084_p13 }
 0x5ac   : > { %p2091_p12 = por %p2090_p6, %p2089_p5 }
 0x5ae   : > { %p2092_p10 = pnand %p2091_p12, %p2085_p3 }
 0x668   : > { %v1327_v6 = vpop.f32.mrb[20].mxu1 }
 0x669   : > { %v1333_v7 = vadd.f32 %v1327_v6, %v1272_v5  ;;  %v1767_v8 = vpop.f32.mrb[21].mxu1 }
 0x66a   : > { %v1330_v9 = vpop.f32.mrb[22].mxu1 }
 0x66b   : > { %1334 = vst.msk [vmem:[%s2628_s21] sm:$0xff] %vm589_vm1, %v1333_v7  ;;  %v1768_v10 = vpop.f32.mrb[23].mxu1 }
 0x66c   : > { %2095 = shalt.err (!%p2092_p10)
}
 0x66d   : > { %s2096_s20 = scalar_lea.hbm %s2672_s13, 128  ;;  %s2100_s24 = scalar_lea.hbm %s2773_s25, 256 }
 0x66e   : > { %p2097_p7 = scmp.ne.s32.totalorder %s2672_s13, %s2096_s20  ;;  %p2101_p0 = scmp.lt.u32.totalorder %s2672_s13, %s2773_s25 }
 0x66f   : > { %p2102_p4 = scmp.lt.u32.totalorder %s2100_s24, %s2096_s20  ;;  %p2104_p1 = scmp.lt.u32.totalorder %s2096_s20, %s2672_s13 }
 0x670   : > { %p2098_p11 = pnand %p2097_p7, %p2772_p2 }
 0x671   : > { %p2103_p8 = por %p2102_p4, %p2101_p0 }
 0x672   : > { %p2099_p9 = pneg %p2098_p11 }
 0x673   : > { %p2105_p13 = por %p2104_p1, %p2103_p8 }
 0x675   : > { %p2106_p3 = pnand %p2105_p13, %p2099_p9 }
 0x677   : > { %2109 = shalt.err (!%p2106_p3)
}
 0x678   : > { %1785 = dma.vmem_to_hbm [thread:$0]  (%p2772_p2), %s2674_s29, 128, %s2672_s13, %s1336_s2  }
 0x679 PF: > { %s2774_s7 = sld [smem:[#allocation23_spill]]  ;;  %s2775_s16 = sld [smem:[#allocation25_spill]] }
 0x67a   : > { %p2777_p6 = scmp.ge.s32.totalorder %s2180_s18, 2 }
 0x67f   : > { %s1386_s28 = sand.u32 1, %s2774_s7   ;;  %p2776_p5 = scmp.ne.s32.totalorder %s2775_s16, 0 }
 0x680   : > { %s1387_s4 = scalar_lea.sflag [#allocation7], %s1386_s28 }
 0x681   : > { %p1807_p12 = pnand %p2777_p6, %p2776_p5 }
 0x683   : > { %2151 = dma.done.wait (!%p1807_p12), %s1387_s4, 128  }
 0x684   : > { %2153 = vsyncadd (!%p1807_p12), %s1387_s4, 4294967168  ;;  %s1396_s8 = scalar_lea.sflag [#allocation16], %s1386_s28 }
 0x685   : > { %2155 = dma.done.wait (!%p1807_p12), %s1396_s8, 256  }
 0x686   : > { %2157 = vsyncadd (!%p1807_p12), %s1396_s8, 4294967040  ;;  %s34_s18 = sadd.s32 1, %s2180_s18   ;;  %s2778_s13 = smov %s2164_s14 }
 0x687   : > { %p31_p10 = scmp.ge.s32.totalorder %s34_s18, 4   ;;  %s2779_s14 = smov %s2168_s15 }
 0x688   : > { %s2780_s15 = smov %s2426_s12  ;;  %s2781_s16 = smov %s2176_s17 }
 0x689   : > { %s2782_s17 = smov %s2784_s26  ;;  %33 = sbr.rel (!%p31_p10) target bundleno = 18 (0x12), region = 170 }
 0x690   :  { %1401 = vsyncpa [#allocation6], 1 }
 0x691   :  { %1403 = vsyncpa [#allocation6 + $0x1], 1 }
 0x692   :  { %1404 = vsyncpa [#allocation9], 1 }
 0x693   :  { %1406 = vsyncpa [#allocation9 + $0x1], 1 }
 0x694   :  { %1407 = vsyncpa [#allocation12], 1 }
 0x695   :  { %1408 = vsyncpa [#allocation7], 1 }
 0x696   :  { %1410 = vsyncpa [#allocation7 + $0x1], 1 }
 0x697   :  { %1411 = vsyncpa [#allocation16], 1 }
 0x698   :  { %1413 = vsyncpa [#allocation16 + $0x1], 1 }

</bundles_post_ra>
